<compile_context>
chip_gen: v5e
topology: v5e:2x2
jax: 0.10.0
libtpu: 0.0.40
codegen_flags: <defaults>
</compile_context>

<pallas_src>
import functools

import jax
import jax.numpy as jnp
from jax.experimental import pallas as pl
from jax.experimental.pallas import tpu as pltpu


P_LAST_ROW = 8  # tile-aligned row offset of the last batch's softmax column in the output tile


def attention_kernel(x_ref, w_ref, p_ref, out_ref, *, B, S, H):
    """x_ref:  (B*S, H)            flattened inputs
       w_ref:  (2H, H)             rows 0:H = linear_att.weight^T, rows H:2H = linear_hidden.weight^T
       p_ref:  (max(B*S, 8), 128)  packed params tile:
                 row 0, lanes 0:H  = linear_att.bias
                 row 1, lanes 0:H  = linear_hidden.bias
                 row 2, lanes 0:H  = att_trans.weight
                 rows 0:B*S, lane H = (mask - 1) * 1e8  (score bias, already in column layout)
       out_ref: (P_LAST_ROW + S, 128) merged output tile:
                 rows 0:B, lanes 0:H            -> per-batch pooled hidden
                 rows 8:8+S, lane 0             -> softmax weights of the LAST batch (column)
    """
    x = x_ref[...]                                                 # (B*S, H)

    # Two lane-0-aligned MXU matmuls from one sublane-stacked weight buffer
    # (avoids the lane-offset-H slice/relayout of a fused (H,2H) result).
    att = jnp.dot(x, w_ref[0:H, :],
                  preferred_element_type=jnp.float32) + p_ref[0:1, 0:H]      # (B*S, H)
    hidden = jnp.dot(x, w_ref[H:2 * H, :],
                     preferred_element_type=jnp.float32) + p_ref[1:2, 0:H]   # (B*S, H)

    # att_trans (H -> 1): VPU multiply + lane reduce (no wasteful N=1 matvec).
    # The mask bias is packed as a (B*S, 1) column, so no lane<->sublane
    # relayout is needed before the add.
    wv_row = p_ref[2:3, 0:H]                                       # (1, H)
    score = jnp.sum(att * wv_row, axis=-1, keepdims=True)          # (B*S, 1)
    score = score + p_ref[0:B * S, H:H + 1]                        # + (mask - 1) * 1e8
    score = score.reshape(B, S, 1)                                 # free sublane split (S == 8)

    # Per-batch softmax over the sequence axis (exact f32 — keeps the 1e-5
    # comparison against the reference tight).
    m = jnp.max(score, axis=1, keepdims=True)                      # (B, 1, 1)
    e = jnp.exp(score - m)
    p = e / jnp.sum(e, axis=1, keepdims=True)                      # (B, S, 1)

    # Weighted sum of hidden rows (S == 8 -> sublane reduce is cheapest here).
    out = jnp.sum(p * hidden.reshape(B, S, H), axis=1)             # (B, H)

    # Single merged output buffer -> one writeback DMA.  p_last is stored as a
    # column at a tile-aligned row, so no in-kernel (S,1)->(1,S) transpose or
    # iota-diagonal trick is required; the wrapper slices both pieces out.
    out_ref[0:B, 0:H] = out
    out_ref[P_LAST_ROW:P_LAST_ROW + S, 0:1] = p[B - 1]


def pack_attention_params(wa, ba, wh, bh, wv, batch, seq):
    """One-time packing of the static Linear parameters (torch layouts):
       wa/wh: (H, H) weight (out, in), ba/bh: (H,), wv: (1, H).
       Done ONCE at init — hoisted out of the per-forward path."""
    H = wa.shape[0]
    assert H <= 127, "mask-bias column is packed at lane H of a 128-lane tile"
    rows = max(batch * seq, 8)
    w_stacked = jnp.concatenate([wa.T, wh.T], axis=0).astype(jnp.float32)     # (2H, H)
    params = jnp.zeros((rows, 128), jnp.float32)
    params = params.at[0, :H].set(ba.astype(jnp.float32))
    params = params.at[1, :H].set(bh.astype(jnp.float32))
    params = params.at[2, :H].set(wv.reshape(-1).astype(jnp.float32))
    return w_stacked, params


@jax.jit
def attention_forward(x, mask, w_stacked, params_static):
    """x: (B, S, H) float32,  mask: (B, S) float in {0, 1}.
       w_stacked / params_static: from pack_attention_params (static, reused)."""
    B, S, H = x.shape
    assert B <= P_LAST_ROW

    x_flat = x.reshape(B * S, H)
    # Only per-call dynamic prep: scatter the 16-value mask-bias column into
    # the params tile (one tiny fused update; keeps the kernel at 3 inputs).
    mbias = (mask.reshape(-1) - 1.0) * jnp.float32(1e8)
    params = params_static.at[0:B * S, H].set(mbias)

    out_rows = P_LAST_ROW + S
    # TODO(synk): if this module runs per-layer in a loop (esp. on v7x), hide
    # the weight DMA with a cross-pallas_call prefetch instead of a grid.
    out_tile = pl.pallas_call(
        functools.partial(attention_kernel, B=B, S=S, H=H),
        out_shape=jax.ShapeDtypeStruct((out_rows, 128), jnp.float32),
        in_specs=[pl.BlockSpec(memory_space=pltpu.MemorySpace.VMEM)] * 3,
        out_specs=pl.BlockSpec(memory_space=pltpu.MemorySpace.VMEM),
    )(x_flat, w_stacked, params)

    ret = out_tile[0:B, 0:H].reshape(-1)                                  # (B*H,)
    att_last = out_tile[P_LAST_ROW:P_LAST_ROW + S, 0].reshape(1, S)       # (1, S)
    return ret, att_last


def attention_reference(x, mask, wa, ba, wh, bh, wv):
    """Pure-JAX reference mirroring the PyTorch forward, for validation."""
    def per_batch(xb, mb):
        att = xb @ wa.T + ba
        hid = xb @ wh.T + bh
        sc = att @ wv.T + (mb[:, None] - 1.0) * 1e8                      # (S, 1)
        p = jax.nn.softmax(sc.reshape(1, -1), axis=1).reshape(-1, 1)
        return jnp.sum(hid * p, axis=0), p.reshape(-1)
    outs, atts = jax.vmap(per_batch)(x, mask)
    return outs.reshape(-1), atts[-1].reshape(1, -1)


if __name__ == "__main__":
    B, S, H = 2, 8, 32          # batch, seq, hidden (bi_lstm=False -> hidden=H)

    key = jax.random.PRNGKey(0)
    kx, kwa, kba, kwh, kbh, kwv = jax.random.split(key, 6)

    x = jax.random.normal(kx, (B, S, H), dtype=jnp.float32)
    mask = jnp.ones((B, S), dtype=jnp.float32)
    mask = mask.at[0, 6:].set(0.0)      # pad out tail of batch 0
    mask = mask.at[1, 5:].set(0.0)      # pad out tail of batch 1

    # Deterministic parameter init (PyTorch nn.Linear shapes).
    wa = 0.1 * jax.random.normal(kwa, (H, H), dtype=jnp.float32)   # linear_att.weight
    ba = 0.1 * jax.random.normal(kba, (H,), dtype=jnp.float32)     # linear_att.bias
    wh = 0.1 * jax.random.normal(kwh, (H, H), dtype=jnp.float32)   # linear_hidden.weight
    bh = 0.1 * jax.random.normal(kbh, (H,), dtype=jnp.float32)     # linear_hidden.bias
    wv = 0.1 * jax.random.normal(kwv, (1, H), dtype=jnp.float32)   # att_trans.weight

    # Static parameter packing: done ONCE, not per forward call.
    w_stacked, params_static = pack_attention_params(wa, ba, wh, bh, wv, B, S)

    ret, att_last = attention_forward(x, mask, w_stacked, params_static)
    jax.block_until_ready((ret, att_last))

    ret_ref, att_last_ref = attention_reference(x, mask, wa, ba, wh, bh, wv)
    assert ret.shape == (B * H,) and att_last.shape == (1, S)
    assert jnp.allclose(ret, ret_ref, rtol=1e-4, atol=1e-4)
    assert jnp.allclose(att_last, att_last_ref, rtol=1e-4, atol=1e-5)

    print("KERNEL_OK")
</pallas_src>

<mosaic_0001>
module attributes {stable_mosaic.version = 11 : i64} {
  func.func @attention_kernel(%arg0: memref<16x32xf32, #tpu.memory_space<vmem>>, %arg1: memref<64x32xf32, #tpu.memory_space<vmem>>, %arg2: memref<16x128xf32, #tpu.memory_space<vmem>>, %arg3: memref<16x128xf32, #tpu.memory_space<vmem>>) attributes {dimension_semantics = [], scalar_prefetch = 0 : i64, scratch_operands = 0 : i64, tpu.core_type = #tpu.core_type<tc>} {
    %c0 = arith.constant 0 : index
    %c0_0 = arith.constant 0 : index
    %0 = vector.load %arg0[%c0, %c0_0] : memref<16x32xf32, #tpu.memory_space<vmem>>, vector<16x32xf32>
    %c0_1 = arith.constant 0 : index
    %c0_2 = arith.constant 0 : index
    %1 = vector.load %arg1[%c0_1, %c0_2] : memref<64x32xf32, #tpu.memory_space<vmem>>, vector<32x32xf32>
    %cst = arith.constant dense<0.000000e+00> : vector<16x32xf32>
    %2 = tpu.matmul %0, %1, %cst {dimension_numbers = #tpu.dot_dimension_numbers<[1], [0], [0], [1], [0, 0, 1, 1], [], []>} : vector<16x32xf32>, vector<32x32xf32>, vector<16x32xf32> -> vector<16x32xf32>
    %c0_3 = arith.constant 0 : index
    %c0_4 = arith.constant 0 : index
    %3 = vector.load %arg2[%c0_3, %c0_4] : memref<16x128xf32, #tpu.memory_space<vmem>>, vector<1x32xf32>
    %4 = vector.broadcast %3 : vector<1x32xf32> to vector<16x32xf32>
    %5 = arith.addf %2, %4 : vector<16x32xf32>
    %c32 = arith.constant 32 : index
    %c0_5 = arith.constant 0 : index
    %6 = vector.load %arg1[%c32, %c0_5] : memref<64x32xf32, #tpu.memory_space<vmem>>, vector<32x32xf32>
    %cst_6 = arith.constant dense<0.000000e+00> : vector<16x32xf32>
    %7 = tpu.matmul %0, %6, %cst_6 {dimension_numbers = #tpu.dot_dimension_numbers<[1], [0], [0], [1], [0, 0, 1, 1], [], []>} : vector<16x32xf32>, vector<32x32xf32>, vector<16x32xf32> -> vector<16x32xf32>
    %c1 = arith.constant 1 : index
    %c0_7 = arith.constant 0 : index
    %8 = vector.load %arg2[%c1, %c0_7] : memref<16x128xf32, #tpu.memory_space<vmem>>, vector<1x32xf32>
    %9 = vector.broadcast %8 : vector<1x32xf32> to vector<16x32xf32>
    %10 = arith.addf %7, %9 : vector<16x32xf32>
    %c2 = arith.constant 2 : index
    %c0_8 = arith.constant 0 : index
    %11 = vector.load %arg2[%c2, %c0_8] : memref<16x128xf32, #tpu.memory_space<vmem>>, vector<1x32xf32>
    %12 = vector.broadcast %11 : vector<1x32xf32> to vector<16x32xf32>
    %13 = arith.mulf %5, %12 : vector<16x32xf32>
    %cst_9 = arith.constant dense<0.000000e+00> : vector<16xf32>
    %14 = vector.multi_reduction <add>, %13, %cst_9 [1] : vector<16x32xf32> to vector<16xf32>
    %15 = vector.shape_cast %14 : vector<16xf32> to vector<16x1xf32>
    %c0_10 = arith.constant 0 : index
    %c32_11 = arith.constant 32 : index
    %16 = vector.load %arg2[%c0_10, %c32_11] : memref<16x128xf32, #tpu.memory_space<vmem>>, vector<16x1xf32>
    %17 = arith.addf %15, %16 : vector<16x1xf32>
    %18 = vector.shape_cast %17 : vector<16x1xf32> to vector<2x8x1xf32>
    %cst_12 = arith.constant dense<0xFF800000> : vector<2x1xf32>
    %19 = vector.multi_reduction <maximumf>, %18, %cst_12 [1] : vector<2x8x1xf32> to vector<2x1xf32>
    %20 = vector.shape_cast %19 : vector<2x1xf32> to vector<2x1x1xf32>
    %21 = vector.broadcast %20 : vector<2x1x1xf32> to vector<2x8x1xf32>
    %22 = arith.subf %18, %21 : vector<2x8x1xf32>
    %23 = math.exp %22 : vector<2x8x1xf32>
    %cst_13 = arith.constant dense<0.000000e+00> : vector<2x1xf32>
    %24 = vector.multi_reduction <add>, %23, %cst_13 [1] : vector<2x8x1xf32> to vector<2x1xf32>
    %25 = vector.shape_cast %24 : vector<2x1xf32> to vector<2x1x1xf32>
    %26 = vector.broadcast %25 : vector<2x1x1xf32> to vector<2x8x1xf32>
    %27 = arith.divf %23, %26 : vector<2x8x1xf32>
    %28 = vector.shape_cast %10 : vector<16x32xf32> to vector<2x8x32xf32>
    %29 = vector.broadcast %27 : vector<2x8x1xf32> to vector<2x8x32xf32>
    %30 = arith.mulf %29, %28 : vector<2x8x32xf32>
    %cst_14 = arith.constant dense<0.000000e+00> : vector<2x32xf32>
    %31 = vector.multi_reduction <add>, %30, %cst_14 [1] : vector<2x8x32xf32> to vector<2x32xf32>
    %c0_15 = arith.constant 0 : index
    %c0_16 = arith.constant 0 : index
    %32 = vector.load %arg3[%c0_15, %c0_16] : memref<16x128xf32, #tpu.memory_space<vmem>>, vector<2x32xf32>
    tpu.vector_store %arg3[%c0_15, %c0_16], %31 {strides = array<i32>} : memref<16x128xf32, #tpu.memory_space<vmem>>, vector<2x32xf32>,
    %33 = vector.extract_strided_slice %27 {offsets = [1, 0, 0], sizes = [1, 8, 1], strides = [1, 1, 1]} : vector<2x8x1xf32> to vector<1x8x1xf32>
    %34 = vector.shape_cast %33 : vector<1x8x1xf32> to vector<8x1xf32>
    %c8 = arith.constant 8 : index
    %c0_17 = arith.constant 0 : index
    %35 = vector.load %arg3[%c8, %c0_17] : memref<16x128xf32, #tpu.memory_space<vmem>>, vector<8x1xf32>
    tpu.vector_store %arg3[%c8, %c0_17], %34 {strides = array<i32>} : memref<16x128xf32, #tpu.memory_space<vmem>>, vector<8x1xf32>,
    return
  }
}

</mosaic_0001>

<bundles_post_ra>
// kernel: attention_forward.1
= control target key start
LH: loop header
LB: loop body
LE: loop exit
PB: predicated region body
PF: predicated region fallthrough
CT: control target
= control target key end

     0   :  { %vm22_vm0 = vcmask 261120   ;;  %vm95_vm1 = vcmask 269568   ;;  %v229_v38 = vmov 32   ;;  %vm196_vm10 = vcmask 7168   ;;  %s314_s1 = inlined_call_operand.vmem [shape: f32[64,32], index: 1, kind: input, shape index: {}]   ;;  %s315_s2 = inlined_call_operand.vmem [shape: f32[16,128], index: 2, kind: input, shape index: {}]   ;;  %s316_s0 = inlined_call_operand.vmem [shape: f32[16,32], index: 0, kind: input, shape index: {}]   ;;  %s317_s3 = inlined_call_operand.vmem [shape: f32[16,128], index: 3, kind: output, shape index: {}]  }
   0x1   :  { %v19_v0 = vld [vmem:[%s314_s1 + $0x18] sm:$0xff]  ;;  %v18_v1 = vld [vmem:[%s314_s1 + $0x10] sm:$0xff]  ;;  %v17_v2 = vld [vmem:[%s314_s1 + $0x8] sm:$0xff]  ;;  %216 = vset.pattern.permute.xlu1 %v229_v38  ;;  %217 = vset.pattern.permute.xlu0 %v229_v38  ;;  %vm188_vm11 = vcmask 1041409   ;;  %vm191_vm12 = vcmask 254976  }
   0x2   :  { %41 = vmatpush.msra.mxu0 %v19_v0  ;;  %206 = vmatpush.msra.mxu2 %v19_v0  ;;  %v16_v3 = vld [vmem:[%s314_s1] sm:$0xff]  ;;  %v15_v5 = vld [vmem:[%s316_s0 + $0x8] sm:$0xff]  ;;  %v55_v23 = vld [vmem:[%s314_s1 + $0x38] sm:$0xff] }
   0x3   :  { %v14_v4 = vld [vmem:[%s316_s0] sm:$0xff]  ;;  %v92_v22 = vld [vmem:[%s315_s2 + $0x8] sm:$0xff]  ;;  %70 = vmatpush.msra.mxu1 %v55_v23  ;;  %210 = vmatpush.msra.mxu3 %v55_v23  ;;  %v54_v26 = vld [vmem:[%s314_s1 + $0x30] sm:$0xff] }
   0x4   :  { %42 = vmatpush.msra.mxu0 %v18_v1  ;;  %207 = vmatpush.msra.mxu2 %v18_v1  ;;  %v218_v6 = vld [vmem:[%s315_s2] ss:$0 sm:$0xff]  ;;  %v219_v7 = vld [vmem:[%s315_s2 + $0x2] ss:$0 sm:$0xff]  ;;  %v53_v29 = vld [vmem:[%s314_s1 + $0x28] sm:$0xff] }
   0x5   :  { %v91_v16 = vld [vmem:[%s315_s2] sm:$0xff]  ;;  %71 = vmatpush.msra.mxu1 %v54_v26  ;;  %211 = vmatpush.msra.mxu3 %v54_v26 }
   0x6   :  { %43 = vmatpush.msra.mxu0 %v17_v2  ;;  %208 = vmatpush.msra.mxu2 %v17_v2  ;;  %v52_v33 = vld [vmem:[%s314_s1 + $0x20] sm:$0xff]  ;;  %s230_s1 = smov 96  }
   0x7   :  { %72 = vmatpush.msra.mxu1 %v53_v29  ;;  %212 = vmatpush.msra.mxu3 %v53_v29 }
   0x8   :  { %44 = vmatpush.msra.mxu0 %v16_v3  ;;  %209 = vmatpush.msra.mxu2 %v16_v3 }
   0x9   :  { %202 = vmatmul.msk.f32.vlgmr.msra.gmra.mxu0 %vm22_vm0, %v14_v4  ;;  %203 = vmatmul.msk.f32.vlgmr.msra.gmra.mxu2 %vm22_vm0, %v15_v5 }
   0xa   :  { %73 = vmatpush.msra.mxu1 %v52_v33  ;;  %213 = vmatpush.msra.mxu3 %v52_v33 }
   0xb   :  { %204 = vmatmul.msk.f32.vlgmr.msra.gmra.mxu1 %vm22_vm0, %v14_v4  ;;  %205 = vmatmul.msk.f32.vlgmr.msra.gmra.mxu3 %vm22_vm0, %v15_v5 }
  0x86   :  { %v46_v8 = vpop.f32.mrf.mxu0 }
  0x87   :  { %v47_v9 = vadd.f32 %v218_v6, %v46_v8 }
  0x89   :  { %v83_v10 = vmul.f32 %v219_v7, %v47_v9 }
  0x8b   :  { %v85_v11 = vsel %vm22_vm0, %v83_v10, 0.0 }
  0x8c   :  { %86 = vadd.xlane.f32.xlu0 %v85_v11  ;;  %v49_v12 = vpop.f32.mrf.mxu2 }
  0x8d   :  { %v50_v13 = vadd.f32 %v218_v6, %v49_v12 }
  0x8f   :  { %v84_v14 = vmul.f32 %v219_v7, %v50_v13 }
  0x91   :  { %v88_v15 = vsel %vm22_vm0, %v84_v14, 0.0 }
  0x94   :  { %89 = vadd.xlane.f32.xlu0 %v88_v15 }
  0xff   :  { %v87_v17 = vpop.xlane.xlu0 %86 }
 0x100   :  { %v93_v18 = vadd.f32 %v91_v16, %v87_v17 }
 0x102   :  { %v96_v19 = vsel %vm95_vm1, %v93_v18, -inf }
 0x103   :  { %v97_v20 = vrot.slane %v96_v19, 4 }
 0x105   :  { %v98_v21 = vmax.f32 %v96_v19, %v97_v20  ;;  %v220_v20 = vld [vmem:[%s315_s2 + $0x1] ss:$0 sm:$0xff] }
 0x107   :  { %v99_v24 = vrot.slane %v98_v21, 2  ;;  %v90_v25 = vpop.xlane.xlu0 %89 }
 0x108   :  { %v94_v27 = vadd.f32 %v92_v22, %v90_v25  ;;  %v78_v25 = vpop.f32.mrf.mxu3 }
 0x109   :  { %v100_v28 = vmax.f32 %v98_v21, %v99_v24  ;;  %v75_v21 = vpop.f32.mrf.mxu1 }
 0x10a   :  { %v103_v30 = vsel %vm95_vm1, %v94_v27, -inf  ;;  %v76_v22 = vadd.f32 %v220_v20, %v75_v21 }
 0x10b   :  { %v101_v31 = vrot.slane %v100_v28, 1  ;;  %v104_v32 = vrot.slane %v103_v30, 4 }
 0x10d   :  { %v102_v34 = vmax.f32 %v100_v28, %v101_v31  ;;  %v105_v35 = vmax.f32 %v103_v30, %v104_v32  ;;  %v79_v28 = vadd.f32 %v220_v20, %v78_v25 }
 0x10f   :  { %v110_v36 = vsub.f32 %v93_v18, %v102_v34  ;;  %v106_v37 = vrot.slane %v105_v35, 2 }
 0x111   :  { %v112_v39 = vmul.f32 1.442695, %v110_v36  ;;  %v107_v40 = vmax.f32 %v105_v35, %v106_v37 }
 0x113   :  { %221 = vpow2.f32 %v112_v39  ;;  %v108_v41 = vrot.slane %v107_v40, 1 }
 0x115   :  { %v109_v42 = vmax.f32 %v107_v40, %v108_v41 }
 0x117   :  { %v111_v43 = vsub.f32 %v94_v27, %v109_v42 }
 0x119   :  { %v222_v44 = vpop.eup %221  ;;  %v114_v45 = vmul.f32 1.442695, %v111_v43 }
 0x11a   :  { %v116_v46 = vsel %vm95_vm1, %v222_v44, 0.0 }
 0x11b   :  { %v117_v47 = vrot.slane %v116_v46, 4  ;;  %223 = vpow2.f32 %v114_v45 }
 0x11d   :  { %v118_v48 = vadd.f32 %v117_v47, %v116_v46 }
 0x11f   :  { %v119_v49 = vrot.slane %v118_v48, 2 }
 0x121   :  { %v224_v50 = vpop.eup %223  ;;  %v120_v51 = vadd.f32 %v119_v49, %v118_v48 }
 0x122   :  { %v123_v52 = vsel %vm95_vm1, %v224_v50, 0.0 }
 0x123   :  { %v121_v53 = vrot.slane %v120_v51, 1  ;;  %v124_v54 = vrot.slane %v123_v52, 4 }
 0x125   :  { %v122_v55 = vadd.f32 %v121_v53, %v120_v51  ;;  %v125_v56 = vadd.f32 %v124_v54, %v123_v52 }
 0x127   :  { %225 = vrcp.f32 %v122_v55  ;;  %v126_v57 = vrot.slane %v125_v56, 2  ;;  %v141_v0 = vand.u32 2147483648, %v122_v55  ;;  %v139_v2 = vand.u32 2147483647, %v122_v55 }
 0x128   :  { %vm135_vm3 = vweird.f32 %v122_v55 }
 0x129   :  { %v127_v58 = vadd.f32 %v126_v57, %v125_v56  ;;  %v142_v5 = vor.u32 1.1754944e-38, %v141_v0  ;;  %vm140_vm5 = vcmp.eq.f32.partialorder %v139_v2, 8.507059e+37 }
 0x12b   :  { %v128_v59 = vrot.slane %v127_v58, 1 }
 0x12d   :  { %v226_v60 = vpop.eup %225  ;;  %v129_v61 = vadd.f32 %v128_v59, %v127_v58 }
 0x12e   :  { %v131_v62 = vmul.f32 %v226_v60, %v122_v55  ;;  %vm136_vm2 = vweird.f32 %v226_v60 }
 0x12f   :  { %227 = vrcp.f32 %v129_v61  ;;  %vm137_vm4 = vmor %vm135_vm3, %vm136_vm2  ;;  %v156_v11 = vand.u32 2147483648, %v129_v61  ;;  %v154_v13 = vand.u32 2147483647, %v129_v61  ;;  %vm150_vm7 = vweird.f32 %v129_v61 }
 0x130   :  { %v132_v63 = vsub.f32 1.0, %v131_v62 }
 0x131   :  { %v157_v15 = vor.u32 1.1754944e-38, %v156_v11  ;;  %vm155_vm9 = vcmp.eq.f32.partialorder %v154_v13, 8.507059e+37 }
 0x132   :  { %v133_v1 = vmul.f32 %v226_v60, %v132_v63 }
 0x134   :  { %v134_v3 = vadd.f32 %v226_v60, %v133_v1 }
 0x135   :  { %v228_v4 = vpop.eup %227 }
 0x136   :  { %v138_v6 = vsel %vm137_vm4, %v226_v60, %v134_v3  ;;  %v146_v7 = vmul.f32 %v228_v4, %v129_v61  ;;  %vm151_vm6 = vweird.f32 %v228_v4 }
 0x137   :  { %v143_v8 = vsel %vm140_vm5, %v142_v5, %v138_v6  ;;  %vm152_vm8 = vmor %vm150_vm7, %vm151_vm6 }
 0x138   :  { %v144_v9 = vmul.f32 %v222_v44, %v143_v8  ;;  %v147_v10 = vsub.f32 1.0, %v146_v7 }
 0x13a   :  { %162 = vperm.xlu1 %216, %v144_v9   ;;  %v148_v12 = vmul.f32 %v228_v4, %v147_v10 }
 0x13c   :  { %v149_v14 = vadd.f32 %v228_v4, %v148_v12 }
 0x13e   :  { %v153_v16 = vsel %vm152_vm8, %v228_v4, %v149_v14 }
 0x13f   :  { %v158_v17 = vsel %vm155_vm9, %v157_v15, %v153_v16 }
 0x140   :  { %v159_v18 = vmul.f32 %v224_v50, %v158_v17 }
 0x142   :  { %193 = vrot.lane.b32.xlu2 %v159_v18, %s230_s1  ;;  %167 = vperm.xlu1 %216, %v159_v18  }
 0x19c   :  { %v194_v19 = vpop.permute.xlu2 %193 }
 0x19d   :  { %197 = vst.msk [vmem:[%s317_s3 + $0x8] sm:$0xff] %vm196_vm10, %v194_v19 }
 0x1ac   :  { %v163_v23 = vpop.permute.xlu1 %162 }
 0x1ad   :  { %v170_v24 = vmul.f32 %v163_v23, %v76_v22 }
 0x1af   :  { %v172_v26 = vsel %vm22_vm0, %v170_v24, 0.0 }
 0x1b0   :  { %v173_v27 = vrot.slane %v172_v26, 4 }
 0x1b2   :  { %v174_v29 = vadd.f32 %v173_v27, %v172_v26 }
 0x1b4   :  { %v168_v30 = vpop.permute.xlu1 %167  ;;  %v175_v32 = vrot.slane %v174_v29, 2 }
 0x1b5   :  { %v171_v31 = vmul.f32 %v168_v30, %v79_v28 }
 0x1b6   :  { %v176_v35 = vadd.f32 %v175_v32, %v174_v29 }
 0x1b7   :  { %v179_v33 = vsel %vm22_vm0, %v171_v31, 0.0 }
 0x1b8   :  { %v180_v34 = vrot.slane %v179_v33, 4  ;;  %v177_v38 = vrot.slane %v176_v35, 1 }
 0x1ba   :  { %v181_v36 = vadd.f32 %v180_v34, %v179_v33  ;;  %v178_v41 = vadd.f32 %v177_v38, %v176_v35 }
 0x1bc   :  { %v182_v37 = vrot.slane %v181_v36, 2 }
 0x1be   :  { %v183_v39 = vadd.f32 %v182_v37, %v181_v36 }
 0x1c0   :  { %v184_v40 = vrot.slane %v183_v39, 1 }
 0x1c2   :  { %v185_v42 = vadd.f32 %v184_v40, %v183_v39 }
 0x1c4   :  { %v189_v43 = vsel %vm188_vm11, %v185_v42, %v178_v41 }
 0x1c5   :  { %192 = vst.msk [vmem:[%s317_s3] sm:$0x3] %vm191_vm12, %v189_v43 }

</bundles_post_ra>
